<compile_context>
chip_gen: v5e
topology: v5e:2x2
jax: 0.10.0
libtpu: 0.0.40
codegen_flags: <defaults>
</compile_context>

<pallas_src>
import functools

import jax
import jax.numpy as jnp
from jax.experimental import pallas as pl
from jax.experimental.pallas import tpu as pltpu


def _round_up(x, m):
    return ((x + m - 1) // m) * m


def _patch_embed_kernel(p_ref, w_ref, b_ref, o_ref):
    # p_ref: (tm, K) bf16 patch rows; w_ref: (K, Ep) bf16 projection (resident);
    # b_ref: (1, Ep) f32 bias (resident). MXU matmul with f32 accumulation.
    acc = jnp.dot(p_ref[...], w_ref[...], preferred_element_type=jnp.float32)
    o_ref[...] = (acc + b_ref[...]).astype(o_ref.dtype)


@functools.partial(jax.jit, static_argnames=("kernel_size", "compute_dtype"))
def patch_embed(x, weight, bias, *, kernel_size, compute_dtype=jnp.bfloat16):
    """x: (B, C, H, W); weight: (E, C, kh, kw); bias: (E,) -> (B, H', W', E)."""
    B, C, H, W = x.shape
    kh, kw = kernel_size
    E = weight.shape[0]
    Hp, Wp = H // kh, W // kw
    M = B * Hp * Wp
    K = C * kh * kw
    out_dtype = x.dtype

    # --- glue: extract non-overlapping patches, flatten to (M, K) ---
    # Cast to the compute dtype *before* the transpose so the materialized
    # copy is half the bytes.
    xc = x.astype(compute_dtype)
    # (B, C, Hp, kh, Wp, kw) -> (B, Hp, Wp, C, kh, kw) -> (M, K); K is (c,i,j)
    # row-major, matching the PyTorch OIHW weight reshape below.
    patches = xc.reshape(B, C, Hp, kh, Wp, kw).transpose(0, 2, 4, 1, 3, 5)
    patches = patches.reshape(M, K)

    w_mat = weight.reshape(E, K).T.astype(compute_dtype)   # (K, E)
    b_row = bias.astype(jnp.float32).reshape(1, E)         # (1, E)

    # --- tiling ---
    # Large row tile (512) amortizes per-step pipeline overhead and fills the
    # MXU; pad M up to a tile multiple instead of the old tm=M fallback.
    tm = 512 if M >= 512 else _round_up(M, 8)
    Mp = _round_up(M, tm)
    # Lane-dense output: pad E up to a multiple of 128 so stores are unmasked.
    Ep = _round_up(E, 128)

    if Mp != M:
        patches = jnp.pad(patches, ((0, Mp - M), (0, 0)))
    if Ep != E:
        w_mat = jnp.pad(w_mat, ((0, 0), (0, Ep - E)))
        b_row = jnp.pad(b_row, ((0, 0), (0, Ep - E)))

    grid = (Mp // tm,)

    itemsize = jnp.dtype(compute_dtype).itemsize
    cost = pl.CostEstimate(
        flops=2 * Mp * K * Ep,
        transcendentals=0,
        bytes_accessed=(Mp * K * itemsize            # patch rows (streamed)
                        + K * Ep * itemsize          # projection (resident)
                        + Ep * 4                     # bias
                        + Mp * Ep * jnp.dtype(out_dtype).itemsize),  # output
    )

    # VMEM budget (double-buffered): 2*(tm*K + tm*Ep*2 + K*Ep)*2B + bias — well
    # under the 16/32 MiB scoped defaults on v5e/v6e/v7x for SAM-scale shapes,
    # so no vmem_limit override is needed.
    out2d = pl.pallas_call(
        _patch_embed_kernel,
        out_shape=jax.ShapeDtypeStruct((Mp, Ep), out_dtype),
        grid_spec=pltpu.PrefetchScalarGridSpec(
            num_scalar_prefetch=0,
            grid=grid,
            in_specs=[
                pl.BlockSpec((tm, K), lambda i: (i, 0)),   # patch rows (streamed)
                pl.BlockSpec((K, Ep), lambda i: (0, 0)),   # projection (resident)
                pl.BlockSpec((1, Ep), lambda i: (0, 0)),   # bias (resident)
            ],
            out_specs=pl.BlockSpec((tm, Ep), lambda i: (i, 0)),
        ),
        compiler_params=pltpu.CompilerParams(
            dimension_semantics=("parallel",)),
        cost_estimate=cost,
    )(patches, w_mat, b_row)

    out2d = out2d[:M, :E]
    return out2d.reshape(B, Hp, Wp, E)


if __name__ == "__main__":
    # Small shapes consistent with the module: B=2, C=3, H=W=16,
    # kernel=stride=(4,4) -> 4x4 patch grid, embed_dim=32.
    B, C, H, W = 2, 3, 16, 16
    kh, kw = 4, 4
    E = 32

    key = jax.random.PRNGKey(0)
    kx, kwgt, kb = jax.random.split(key, 3)

    x = jax.random.normal(kx, (B, C, H, W), dtype=jnp.float32)
    # Deterministic Conv2d-style init (uniform +- 1/sqrt(fan_in)).
    fan_in = C * kh * kw
    bound = 1.0 / (fan_in ** 0.5)
    weight = jax.random.uniform(kwgt, (E, C, kh, kw), jnp.float32, -bound, bound)
    bias = jax.random.uniform(kb, (E,), jnp.float32, -bound, bound)

    out = patch_embed(x, weight, bias, kernel_size=(kh, kw))
    jax.block_until_ready(out)
    assert out.shape == (B, H // kh, W // kw, E)
    assert out.dtype == x.dtype

    # Check 1: f32 conv on bf16-rounded inputs (matches kernel precision).
    xr = x.astype(jnp.bfloat16).astype(jnp.float32)
    wr = weight.astype(jnp.bfloat16).astype(jnp.float32)
    ref = jax.lax.conv_general_dilated(
        xr, wr, window_strides=(kh, kw), padding="VALID",
        dimension_numbers=("NCHW", "OIHW", "NCHW"))
    ref = jnp.transpose(ref, (0, 2, 3, 1)) + bias.reshape(1, 1, 1, E)
    assert jnp.allclose(out, ref, atol=1e-4, rtol=1e-4)

    # Check 2: full f32 conv (module semantics) — loose tol for bf16 operands.
    ref32 = jax.lax.conv_general_dilated(
        x, weight, window_strides=(kh, kw), padding="VALID",
        dimension_numbers=("NCHW", "OIHW", "NCHW"))
    ref32 = jnp.transpose(ref32, (0, 2, 3, 1)) + bias.reshape(1, 1, 1, E)
    assert jnp.allclose(out, ref32, atol=3e-2, rtol=3e-2)

    print("KERNEL_OK")
</pallas_src>

<mosaic_0001>
module attributes {stable_mosaic.version = 11 : i64} {
  func.func @_patch_embed_kernel(%arg0: i32, %arg1: memref<32x48xbf16, #tpu.memory_space<vmem>>, %arg2: memref<48x128xbf16, #tpu.memory_space<vmem>>, %arg3: memref<1x128xf32, #tpu.memory_space<vmem>>, %arg4: memref<32x128xf32, #tpu.memory_space<vmem>>) attributes {dimension_semantics = [#tpu.dimension_semantics<parallel>], iteration_bounds = array<i64: 1>, scalar_prefetch = 0 : i64, scratch_operands = 0 : i64, tpu.core_type = #tpu.core_type<tc>, window_params = [{transform_indices = @transform_0, window_bounds = array<i64: 32, 48>}, {pipeline_mode = #tpu.pipeline_mode<synchronous>, transform_indices = @transform_1, window_bounds = array<i64: 48, 128>}, {pipeline_mode = #tpu.pipeline_mode<synchronous>, transform_indices = @transform_2, window_bounds = array<i64: 1, 128>}, {transform_indices = @transform_3, window_bounds = array<i64: 32, 128>}]} {
    %c0 = arith.constant 0 : index
    %c0_0 = arith.constant 0 : index
    %0 = vector.load %arg1[%c0, %c0_0] : memref<32x48xbf16, #tpu.memory_space<vmem>>, vector<32x48xbf16>
    %c0_1 = arith.constant 0 : index
    %c0_2 = arith.constant 0 : index
    %1 = vector.load %arg2[%c0_1, %c0_2] : memref<48x128xbf16, #tpu.memory_space<vmem>>, vector<48x128xbf16>
    %cst = arith.constant dense<0.000000e+00> : vector<32x128xf32>
    %2 = tpu.matmul %0, %1, %cst {dimension_numbers = #tpu.dot_dimension_numbers<[1], [0], [0], [1], [0, 0, 1, 1], [], []>} : vector<32x48xbf16>, vector<48x128xbf16>, vector<32x128xf32> -> vector<32x128xf32>
    %c0_3 = arith.constant 0 : index
    %c0_4 = arith.constant 0 : index
    %3 = vector.load %arg3[%c0_3, %c0_4] : memref<1x128xf32, #tpu.memory_space<vmem>>, vector<1x128xf32>
    %4 = vector.broadcast %3 : vector<1x128xf32> to vector<32x128xf32>
    %5 = arith.addf %2, %4 : vector<32x128xf32>
    %c0_5 = arith.constant 0 : index
    %c0_6 = arith.constant 0 : index
    %6 = vector.load %arg4[%c0_5, %c0_6] : memref<32x128xf32, #tpu.memory_space<vmem>>, vector<32x128xf32>
    tpu.vector_store %arg4[%c0_5, %c0_6], %5 {strides = array<i32>} : memref<32x128xf32, #tpu.memory_space<vmem>>, vector<32x128xf32>,
    return
  }
  func.func @transform_0(%arg0: i32) -> (i32, i32) {
    %c0_i32 = arith.constant 0 : i32
    %c0_i32_0 = arith.constant 0 : i32
    return %arg0, %c0_i32 : i32, i32
  }
  func.func @transform_1(%arg0: i32) -> (i32, i32) {
    %c0_i32 = arith.constant 0 : i32
    %c0_i32_0 = arith.constant 0 : i32
    %c0_i32_1 = arith.constant 0 : i32
    return %c0_i32, %c0_i32_0 : i32, i32
  }
  func.func @transform_2(%arg0: i32) -> (i32, i32) {
    %c0_i32 = arith.constant 0 : i32
    %c0_i32_0 = arith.constant 0 : i32
    %c0_i32_1 = arith.constant 0 : i32
    return %c0_i32, %c0_i32_0 : i32, i32
  }
  func.func @transform_3(%arg0: i32) -> (i32, i32) {
    %c0_i32 = arith.constant 0 : i32
    %c0_i32_0 = arith.constant 0 : i32
    return %arg0, %c0_i32 : i32, i32
  }
}

</mosaic_0001>

<bundles_post_ra>
// kernel: patch_embed.1
= control target key start
LH: loop header
LB: loop body
LE: loop exit
PB: predicated region body
PF: predicated region fallthrough
CT: control target
= control target key end

     0   :  { %s210_s0 = inlined_call_operand.vmem [shape: bf16[32,48], index: 0, kind: input, shape index: {}]   ;;  %s211_s1 = inlined_call_operand.vmem [shape: bf16[48,128], index: 1, kind: input, shape index: {}]   ;;  %s212_s2 = inlined_call_operand.vmem [shape: f32[1,128], index: 2, kind: input, shape index: {}]   ;;  %s213_s3 = inlined_call_operand.hbm [shape: f32[32,128], index: 3, kind: output, shape index: {}]  }
   0x1   :  { %v132_v0 = vld [vmem:[%s211_s1 + $0x10] sm:$0xff]  ;;  %v131_v1 = vld [vmem:[%s211_s1 + $0x8] sm:$0xff] }
   0x2   :  { %70 = vmatpush.bf16.msra.mxu0 %v132_v0  ;;  %133 = vmatpush.bf16.msra.mxu1 %v132_v0 }
   0x3   :  { %8 = vsyncpa [#allocation3], 0  ;;  %v130_v2 = vld [vmem:[%s211_s1] sm:$0xff]  ;;  %v129_v4 = vld [vmem:[%s210_s0 + $0x8] sm:$0xff]  ;;  %vm58_vm0 = vcmask 392192   ;;  %s166_s1 = smov [#allocation2]  }
   0x4   :  { %v128_v3 = vld [vmem:[%s210_s0] sm:$0xff]  ;;  %s92_s24 = sshll.u32 %s166_s1, 4  ;;  %s94_s0 = sshll.u32 %s213_s3, 4  ;;  %s93_s24 = int_to_ptr.vmem [resolvable:$true] %s92_s24  ;;  %s95_s0 = int_to_ptr.hbm [resolvable:$true] %s94_s0 }
   0x5   :  { %v139_v5 = vld [vmem:[%s212_s2] ss:$0 sm:$0xff]  ;;  %s167_s2 = smov 128   ;;  %s168_s27 = smov 8  }
   0x6   :  { %71 = vmatpush.bf16.msra.mxu0 %v131_v1  ;;  %134 = vmatpush.bf16.msra.mxu1 %v131_v1 }
   0xa   :  { %72 = vmatpush.bf16.msra.mxu0 %v130_v2  ;;  %135 = vmatpush.bf16.msra.mxu1 %v130_v2 }
   0xd   :  { %126 = vmatmul.msk.bf16.vlgmr.msra.gmra.mxu0 %vm58_vm0, %v128_v3  ;;  %127 = vmatmul.msk.bf16.vlgmr.msra.gmra.mxu1 %vm58_vm0, %v129_v4 }
  0x8a   :  { %v74_v6 = vpop.f32.mrf.mxu0  ;;  %v79_v7 = vpop.f32.mrf.mxu1 }
  0x8b   :  { %v75_v8 = vadd.f32 %v139_v5, %v74_v6  ;;  %v80_v9 = vadd.f32 %v139_v5, %v79_v7 }
  0x8d   :  { %84 = vst [vmem:[#allocation2] sm:$0xff] %v75_v8 }
  0x8e   :  { %86 = vst [vmem:[#allocation2 + $0x10] sm:$0xff] %v80_v9 }
  0x92   :  { %v76_v10 = vpop.f32.mrf.mxu0  ;;  %v81_v11 = vpop.f32.mrf.mxu1 }
  0x93   :  { %v77_v12 = vadd.f32 %v139_v5, %v76_v10  ;;  %v82_v13 = vadd.f32 %v139_v5, %v81_v11 }
  0x95   :  { %85 = vst [vmem:[#allocation2 + $0x8] sm:$0xff] %v77_v12 }
  0x96   :  { %87 = vst [vmem:[#allocation2 + $0x18] sm:$0xff] %v82_v13 }
  0x97   :  { %100 = dma.vmem_to_hbm [thread:$0]  %s93_s24, 512, %s95_s0, [#allocation3], %s167_s2, %s167_s2, %s168_s27  }
  0x98   :  { %164 = dma.done.wait [#allocation3], 512  }
  0x99   :  { %165 = vsyncadd [#allocation3], 4294966784 }
  0x9a   :  { %105 = vsyncpa [#allocation3], 1 }

</bundles_post_ra>
